<compile_context>
chip_gen: v7x
topology: tpu7x:2x2x1
jax: 0.10.0
libtpu: 0.0.40
codegen_flags: <defaults>
</compile_context>

<pallas_src>
import functools

import jax
import jax.numpy as jnp
from jax import lax
from jax.experimental import pallas as pl
from jax.experimental.pallas import tpu as pltpu


# ------------------------- per-generation sizing --------------------------- #

@functools.lru_cache(maxsize=None)
def _vmem_limit_bytes():
    # ~75% of physical VMEM: 96 MiB on v5e/v6e (128 MiB parts), 48 MiB on v7x
    # (64 MiB per TensorCore). Conservative fallback if the query fails.
    try:
        cap = int(pltpu.get_tpu_info().vmem_capacity_bytes)
    except Exception:
        cap = 64 * 1024 * 1024
    return min((cap * 3) // 4, 112 * 1024 * 1024)


def _compiler_params(semantics, vmem_limit):
    return pltpu.CompilerParams(
        dimension_semantics=semantics, vmem_limit_bytes=vmem_limit)


def _row_tile(rows, vmem_limit):
    # 512-row tiles reach ~85% of HBM roofline (vs ~63% at 256); use 256 on
    # small-VMEM parts (v7x).
    target = 512 if vmem_limit >= 64 * 1024 * 1024 else 256
    return rows if rows <= target else target


def _resident_spec(shape):
    """BlockSpec for a weight that stays resident across the whole grid.

    Single-buffered (pl.Buffered(1)) since the block index never changes, so
    large weights are not double-buffered (important on v7x's 64 MiB VMEM).
    """
    zeros = (0,) * len(shape)
    idx = lambda *args, _z=zeros: _z
    try:
        return pl.BlockSpec(shape, idx, pipeline_mode=pl.Buffered(1))
    except Exception:  # pipeline_mode/Buffered(1) unsupported -> default spec
        return pl.BlockSpec(shape, idx)


# ------------------------------ Pallas kernels ----------------------------- #

def q_proj_kernel(x_ref, wq_ref, q_ref):
    # q = x @ Wq
    q_ref[...] = jnp.dot(x_ref[...], wq_ref[...],
                         preferred_element_type=jnp.float32).astype(q_ref.dtype)


def q_proj_lora_kernel(x_ref, wq_ref, a_ref, b_ref, q_ref, qlora_ref, *,
                       lora_scale):
    # q = x @ Wq ; q_lora = q + scale * (x @ A) @ B   (base matmul reused)
    x = x_ref[...]
    base = jnp.dot(x, wq_ref[...], preferred_element_type=jnp.float32)
    q_ref[...] = base.astype(q_ref.dtype)
    xa = jnp.dot(x, a_ref[...], preferred_element_type=jnp.float32)
    delta = jnp.dot(xa.astype(b_ref.dtype), b_ref[...],
                    preferred_element_type=jnp.float32)
    qlora_ref[...] = (base + lora_scale * delta).astype(qlora_ref.dtype)


def kv_proj_kernel(c_ref, wkv_ref, k_ref, v_ref, *, d_inner):
    # kv = c @ [Wk | Wv]  (context read once, one wide MXU matmul)
    kv = jnp.dot(c_ref[...], wkv_ref[...], preferred_element_type=jnp.float32)
    k_ref[...] = kv[:, :d_inner].astype(k_ref.dtype)
    v_ref[...] = kv[:, d_inner:].astype(v_ref.dtype)


def kv_proj_lora_kernel(c_ref, wkv_ref, ab_ref, kb_ref, vb_ref,
                        k_ref, v_ref, klora_ref, vlora_ref, *,
                        lora_scale, d_inner, rank):
    c = c_ref[...]
    kv = jnp.dot(c, wkv_ref[...], preferred_element_type=jnp.float32)
    k = kv[:, :d_inner]
    v = kv[:, d_inner:]
    k_ref[...] = k.astype(k_ref.dtype)
    v_ref[...] = v.astype(v_ref.dtype)
    # Both LoRA "A" matmuls fused: c @ [A_k | A_v]  -> (rows, 2r)
    cab = jnp.dot(c, ab_ref[...], preferred_element_type=jnp.float32)
    dk = jnp.dot(cab[:, :rank].astype(kb_ref.dtype), kb_ref[...],
                 preferred_element_type=jnp.float32)
    dv = jnp.dot(cab[:, rank:].astype(vb_ref.dtype), vb_ref[...],
                 preferred_element_type=jnp.float32)
    klora_ref[...] = (k + lora_scale * dk).astype(klora_ref.dtype)
    vlora_ref[...] = (v + lora_scale * dv).astype(vlora_ref.dtype)


def attn_out_proj_kernel(q_ref, k_ref, v_ref, wo_ref, bo_ref, o_ref,
                         m_scr, l_scr, acc_scr, *, heads, dim_head, sm_scale):
    # Flash-style attention over the KV ("arbitrary") grid axis with online
    # softmax, all heads per step, q/k/v in lane-dense (tq, H*dh) layout, and
    # the to_out[0] projection (Wo, bo) fused into the finalize so the
    # attention output never round-trips HBM.
    kv_i = pl.program_id(2)

    @pl.when(kv_i == 0)
    def _init():
        m_scr[...] = jnp.full(m_scr.shape, -jnp.inf, jnp.float32)
        l_scr[...] = jnp.zeros(l_scr.shape, jnp.float32)
        acc_scr[...] = jnp.zeros(acc_scr.shape, jnp.float32)

    # sm_scale folded into q once per grid step (not per head per KV step).
    q = (q_ref[0] * sm_scale).astype(q_ref.dtype)   # (tq, H*dh)
    k = k_ref[0]                                    # (tk, H*dh)
    v = v_ref[0]                                    # (tk, H*dh)

    # TODO(synk): for large head counts with dim_head % 128 == 0, move heads
    # to a grid axis (or a fori_loop with lane-aligned dynamic slices) to
    # bound vreg live ranges; static unroll is fine at these head counts.
    for h in range(heads):
        lo = h * dim_head
        hi = lo + dim_head
        qh = q[:, lo:hi]
        kh = k[:, lo:hi]
        vh = v[:, lo:hi]
        # Contract the dh axis directly (no in-kernel transpose of k).
        s = lax.dot_general(qh, kh, (((1,), (1,)), ((), ())),
                            preferred_element_type=jnp.float32)    # (tq, tk)
        m_prev = m_scr[h]                                          # (tq, 128) lane-replicated
        m_new = jnp.maximum(m_prev, jnp.max(s, axis=-1, keepdims=True))
        alpha = jnp.exp(m_prev - m_new)                            # (tq, 128)
        p = jnp.exp(s - m_new[:, :1])
        l_scr[h] = alpha * l_scr[h] + jnp.sum(p, axis=-1, keepdims=True)
        acc_scr[h] = alpha[:, :1] * acc_scr[h] + jnp.dot(
            p.astype(vh.dtype), vh, preferred_element_type=jnp.float32)
        m_scr[h] = m_new

    @pl.when(kv_i == pl.num_programs(2) - 1)
    def _finalize():
        # out = sum_h (acc_h / l_h) @ Wo[h*dh:(h+1)*dh, :] + bo
        out = bo_ref[...].astype(jnp.float32)                       # (1, Dq)
        for h in range(heads):
            lo = h * dim_head
            hi = lo + dim_head
            inv_l = pl.reciprocal(l_scr[h][:, :1], approx=True)     # EUP, off the VALU
            ph = (acc_scr[h] * inv_l).astype(wo_ref.dtype)
            out = out + jnp.dot(ph, wo_ref[lo:hi, :],
                                preferred_element_type=jnp.float32)
        o_ref[0] = out.astype(o_ref.dtype)


# -------------------------- parameter preparation -------------------------- #

def prepare_params(p, compute_dtype=jnp.bfloat16):
    """One-time prep (hoisted out of the forward path): dtype casts plus the
    [Wk | Wv] and [A_k | A_v] concatenations."""
    cd = compute_dtype
    return {
        "dtype": cd,
        "heads": int(p["heads"]),
        "dim_head": int(p["dim_head"]),
        "rank": int(p["rank"]),
        "lora_scale": float(p["alpha"]) / float(p["rank"]),
        "wq": p["wq"].astype(cd),
        "wkv": jnp.concatenate([p["wk"], p["wv"]], axis=1).astype(cd),
        "wo": p["wo"].astype(cd),
        "bo": p["bo"].astype(cd),
        "qa": p["q_A"].astype(cd),
        "qb": p["q_B"].astype(cd),
        "kvab": jnp.concatenate([p["k_A"], p["v_A"]], axis=1).astype(cd),
        "kb": p["k_B"].astype(cd),
        "vb": p["v_B"].astype(cd),
    }


# ------------------------------ forward (module) --------------------------- #

def lora_attention_forward(prepared, hidden_states, context=None, mask=None,
                           return_lora_qkv=False):
    # TODO(synk): attention mask is not implemented (the module call path uses mask=None).
    if context is None:
        context = hidden_states

    cd = prepared["dtype"]
    H, dh = prepared["heads"], prepared["dim_head"]
    D = H * dh
    rank = prepared["rank"]
    lora_scale = prepared["lora_scale"]

    B, N, Dq = hidden_states.shape
    M, Dc = context.shape[1], context.shape[2]
    out_dtype = hidden_states.dtype
    vmem_limit = _vmem_limit_bytes()

    x2 = hidden_states.reshape(B * N, Dq).astype(cd)
    c2 = context.reshape(B * M, Dc).astype(cd)
    wq, wkv, wo, bo = prepared["wq"], prepared["wkv"], prepared["wo"], prepared["bo"]

    # ---- Q projection (optionally with fused rank-r LoRA delta) ----
    Rq = B * N
    trq = _row_tile(Rq, vmem_limit)
    q_grid = (pl.cdiv(Rq, trq),)
    q_lora = None
    if return_lora_qkv:
        q2d, q_lora = pl.pallas_call(
            functools.partial(q_proj_lora_kernel, lora_scale=lora_scale),
            out_shape=(jax.ShapeDtypeStruct((Rq, D), cd),
                       jax.ShapeDtypeStruct((Rq, D), cd)),
            grid=q_grid,
            in_specs=[pl.BlockSpec((trq, Dq), lambda i: (i, 0)),
                      _resident_spec((Dq, D)),
                      _resident_spec((Dq, rank)),
                      _resident_spec((rank, D))],
            out_specs=(pl.BlockSpec((trq, D), lambda i: (i, 0)),
                       pl.BlockSpec((trq, D), lambda i: (i, 0))),
            compiler_params=_compiler_params(("parallel",), vmem_limit),
        )(x2, wq, prepared["qa"], prepared["qb"])
    else:
        q2d = pl.pallas_call(
            q_proj_kernel,
            out_shape=jax.ShapeDtypeStruct((Rq, D), cd),
            grid=q_grid,
            in_specs=[pl.BlockSpec((trq, Dq), lambda i: (i, 0)),
                      _resident_spec((Dq, D))],
            out_specs=pl.BlockSpec((trq, D), lambda i: (i, 0)),
            compiler_params=_compiler_params(("parallel",), vmem_limit),
        )(x2, wq)

    # ---- fused K/V projection ([Wk|Wv]), optionally with LoRA deltas ----
    Rkv = B * M
    trkv = _row_tile(Rkv, vmem_limit)
    kv_grid = (pl.cdiv(Rkv, trkv),)
    k_lora = v_lora = None
    if return_lora_qkv:
        k2d, v2d, k_lora, v_lora = pl.pallas_call(
            functools.partial(kv_proj_lora_kernel, lora_scale=lora_scale,
                              d_inner=D, rank=rank),
            out_shape=tuple(jax.ShapeDtypeStruct((Rkv, D), cd) for _ in range(4)),
            grid=kv_grid,
            in_specs=[pl.BlockSpec((trkv, Dc), lambda i: (i, 0)),
                      _resident_spec((Dc, 2 * D)),
                      _resident_spec((Dc, 2 * rank)),
                      _resident_spec((rank, D)),
                      _resident_spec((rank, D))],
            out_specs=tuple(pl.BlockSpec((trkv, D), lambda i: (i, 0))
                            for _ in range(4)),
            compiler_params=_compiler_params(("parallel",), vmem_limit),
        )(c2, wkv, prepared["kvab"], prepared["kb"], prepared["vb"])
    else:
        k2d, v2d = pl.pallas_call(
            functools.partial(kv_proj_kernel, d_inner=D),
            out_shape=(jax.ShapeDtypeStruct((Rkv, D), cd),
                       jax.ShapeDtypeStruct((Rkv, D), cd)),
            grid=kv_grid,
            in_specs=[pl.BlockSpec((trkv, Dc), lambda i: (i, 0)),
                      _resident_spec((Dc, 2 * D))],
            out_specs=(pl.BlockSpec((trkv, D), lambda i: (i, 0)),
                       pl.BlockSpec((trkv, D), lambda i: (i, 0))),
            compiler_params=_compiler_params(("parallel",), vmem_limit),
        )(c2, wkv)

    # ---- flash attention + fused output projection ----
    q3 = q2d.reshape(B, N, D)     # pure metadata reshapes, no transposes
    k3 = k2d.reshape(B, M, D)
    v3 = v2d.reshape(B, M, D)

    tq_target = 512 if vmem_limit >= 64 * 1024 * 1024 else 256   # smaller on v7x
    tk_target = 256
    tq = N if N <= tq_target else tq_target
    tk = M if M <= tk_target else tk_target
    if M > tk:
        assert M % tk == 0, "KV tiling requires M % tk == 0"
        # TODO(synk): ragged KV tiles would need explicit masking of padded keys.
    # Keep >= 2 parallel grid iterations so both v7x TensorCores get work.
    if B * pl.cdiv(N, tq) < 2 and N > 8:
        tq = max(8, ((pl.cdiv(N, 2) + 7) // 8) * 8)

    sm_scale = float(dh) ** -0.5
    # Note: the QK^T contraction (K = dim_head) only partially fills the MXU;
    # tq/tk are kept >= 256 at large shapes to fill the M/N dims instead.
    base_output = pl.pallas_call(
        functools.partial(attn_out_proj_kernel, heads=H, dim_head=dh,
                          sm_scale=sm_scale),
        out_shape=jax.ShapeDtypeStruct((B, N, Dq), out_dtype),
        grid=(B, pl.cdiv(N, tq), M // tk),
        in_specs=[
            pl.BlockSpec((1, tq, D), lambda b, qi, ki: (b, qi, 0)),
            pl.BlockSpec((1, tk, D), lambda b, qi, ki: (b, ki, 0)),
            pl.BlockSpec((1, tk, D), lambda b, qi, ki: (b, ki, 0)),
            _resident_spec((D, Dq)),       # Wo resident
            _resident_spec((1, Dq)),       # bo resident
        ],
        out_specs=pl.BlockSpec((1, tq, Dq), lambda b, qi, ki: (b, qi, 0)),
        scratch_shapes=[
            pltpu.VMEM((H, tq, 128), jnp.float32),   # running max m (lane-replicated)
            pltpu.VMEM((H, tq, 128), jnp.float32),   # running denom l (lane-replicated)
            pltpu.VMEM((H, tq, dh), jnp.float32),    # accumulator
        ],
        compiler_params=_compiler_params(("parallel", "parallel", "arbitrary"),
                                         vmem_limit),
    )(q3, k3, v3, wo, bo)

    if return_lora_qkv:
        # Module computes LoRA-augmented q/k/v then discards them; returned
        # here only when explicitly requested (fused rank-r deltas).
        return base_output, (q_lora, k_lora, v_lora)
    return base_output


# ----------------------------- pure-JAX reference --------------------------- #

def reference_forward(p, hidden, context):
    B, N, Dq = hidden.shape
    M = context.shape[1]
    H, dh = p["heads"], p["dim_head"]
    q = hidden @ p["wq"]
    k = context @ p["wk"]
    v = context @ p["wv"]
    qh = q.reshape(B, N, H, dh).transpose(0, 2, 1, 3)
    kh = k.reshape(B, M, H, dh).transpose(0, 2, 1, 3)
    vh = v.reshape(B, M, H, dh).transpose(0, 2, 1, 3)
    s = jnp.einsum("bhnd,bhmd->bhnm", qh, kh) * (float(dh) ** -0.5)
    a = jax.nn.softmax(s, axis=-1)
    o = jnp.einsum("bhnm,bhmd->bhnd", a, vh)
    o = o.transpose(0, 2, 1, 3).reshape(B, N, H * dh)
    return o @ p["wo"] + p["bo"].reshape(-1)


# ----------------------------------- main ----------------------------------- #

if __name__ == "__main__":
    key = jax.random.PRNGKey(0)
    B, N, M = 2, 8, 8
    query_dim, context_dim = 32, 32
    heads, dim_head = 4, 8
    inner = heads * dim_head
    rank, alpha = 4, 1.0

    ks = jax.random.split(key, 13)
    params = {
        "heads": heads, "dim_head": dim_head, "rank": rank, "alpha": alpha,
        # frozen base-attention weights (pre-transposed to (in, out))
        "wq": jax.random.normal(ks[0], (query_dim, inner), jnp.float32) * 0.05,
        "wk": jax.random.normal(ks[1], (context_dim, inner), jnp.float32) * 0.05,
        "wv": jax.random.normal(ks[2], (context_dim, inner), jnp.float32) * 0.05,
        "wo": jax.random.normal(ks[3], (inner, query_dim), jnp.float32) * 0.05,
        "bo": jax.random.normal(ks[4], (1, query_dim), jnp.float32) * 0.05,
        # LoRA: A ~ N(0, 1/rank) per module init; B nonzero here (as if
        # trained) so the fused delta path is actually exercised.
        "q_A": jax.random.normal(ks[5], (query_dim, rank), jnp.float32) / rank,
        "q_B": jax.random.normal(ks[6], (rank, inner), jnp.float32) * 0.05,
        "k_A": jax.random.normal(ks[7], (context_dim, rank), jnp.float32) / rank,
        "k_B": jax.random.normal(ks[8], (rank, inner), jnp.float32) * 0.05,
        "v_A": jax.random.normal(ks[9], (context_dim, rank), jnp.float32) / rank,
        "v_B": jax.random.normal(ks[10], (rank, inner), jnp.float32) * 0.05,
    }

    hidden = jax.random.normal(ks[11], (B, N, query_dim), jnp.float32)
    context = jax.random.normal(ks[12], (B, M, context_dim), jnp.float32)

    ref = reference_forward(params, hidden, context)
    scale = alpha / rank
    q_lora_ref = hidden @ params["wq"] + scale * ((hidden @ params["q_A"]) @ params["q_B"])
    k_lora_ref = context @ params["wk"] + scale * ((context @ params["k_A"]) @ params["k_B"])
    v_lora_ref = context @ params["wv"] + scale * ((context @ params["v_A"]) @ params["v_B"])

    # f32 compute path, with the (module-discarded) LoRA q/k/v auxiliaries.
    prep_f32 = prepare_params(params, jnp.float32)
    out_f32, (ql, kl, vl) = lora_attention_forward(
        prep_f32, hidden, context, mask=None, return_lora_qkv=True)
    jax.block_until_ready((out_f32, ql, kl, vl))
    assert out_f32.shape == (B, N, query_dim)
    assert jnp.allclose(out_f32.astype(jnp.float32), ref, atol=2e-3, rtol=2e-3), \
        "f32 mismatch vs reference"
    assert jnp.allclose(ql.astype(jnp.float32).reshape(B, N, inner), q_lora_ref,
                        atol=2e-3, rtol=2e-3), "q_lora mismatch"
    assert jnp.allclose(kl.astype(jnp.float32).reshape(B, M, inner), k_lora_ref,
                        atol=2e-3, rtol=2e-3), "k_lora mismatch"
    assert jnp.allclose(vl.astype(jnp.float32).reshape(B, M, inner), v_lora_ref,
                        atol=2e-3, rtol=2e-3), "v_lora mismatch"

    # bf16 default compute path (MXU-native inputs, f32 accumulation);
    # LoRA auxiliaries skipped (module discards them anyway).
    prep_bf16 = prepare_params(params)  # bf16 default
    out_bf16 = lora_attention_forward(prep_bf16, hidden, context, mask=None)
    jax.block_until_ready(out_bf16)
    assert jnp.allclose(out_bf16.astype(jnp.float32), ref, atol=3e-2, rtol=3e-2), \
        "bf16 mismatch vs reference"

    print("KERNEL_OK")
</pallas_src>

<mosaic_0001>
module attributes {stable_mosaic.version = 11 : i64} {
  func.func @q_proj_lora_kernel(%arg0: i32, %arg1: memref<16x32xf32, #tpu.memory_space<vmem>>, %arg2: memref<32x32xf32, #tpu.memory_space<vmem>>, %arg3: memref<32x4xf32, #tpu.memory_space<vmem>>, %arg4: memref<4x32xf32, #tpu.memory_space<vmem>>, %arg5: memref<16x32xf32, #tpu.memory_space<vmem>>, %arg6: memref<16x32xf32, #tpu.memory_space<vmem>>) attributes {dimension_semantics = [#tpu.dimension_semantics<parallel>], iteration_bounds = array<i64: 1>, scalar_prefetch = 0 : i64, scratch_operands = 0 : i64, tpu.core_type = #tpu.core_type<tc>, window_params = [{transform_indices = @transform_0, window_bounds = array<i64: 16, 32>}, {pipeline_mode = #tpu.pipeline_mode<synchronous>, transform_indices = @transform_1, window_bounds = array<i64: 32, 32>}, {pipeline_mode = #tpu.pipeline_mode<synchronous>, transform_indices = @transform_2, window_bounds = array<i64: 32, 4>}, {pipeline_mode = #tpu.pipeline_mode<synchronous>, transform_indices = @transform_3, window_bounds = array<i64: 4, 32>}, {transform_indices = @transform_4, window_bounds = array<i64: 16, 32>}, {transform_indices = @transform_5, window_bounds = array<i64: 16, 32>}]} {
    %c0 = arith.constant 0 : index
    %c0_0 = arith.constant 0 : index
    %0 = vector.load %arg1[%c0, %c0_0] : memref<16x32xf32, #tpu.memory_space<vmem>>, vector<16x32xf32>
    %c0_1 = arith.constant 0 : index
    %c0_2 = arith.constant 0 : index
    %1 = vector.load %arg2[%c0_1, %c0_2] : memref<32x32xf32, #tpu.memory_space<vmem>>, vector<32x32xf32>
    %cst = arith.constant dense<0.000000e+00> : vector<16x32xf32>
    %2 = tpu.matmul %0, %1, %cst {dimension_numbers = #tpu.dot_dimension_numbers<[1], [0], [0], [1], [0, 0, 1, 1], [], []>} : vector<16x32xf32>, vector<32x32xf32>, vector<16x32xf32> -> vector<16x32xf32>
    %c0_3 = arith.constant 0 : index
    %c0_4 = arith.constant 0 : index
    %3 = vector.load %arg5[%c0_3, %c0_4] : memref<16x32xf32, #tpu.memory_space<vmem>>, vector<16x32xf32>
    tpu.vector_store %arg5[%c0_3, %c0_4], %2 {strides = array<i32>} : memref<16x32xf32, #tpu.memory_space<vmem>>, vector<16x32xf32>,
    %c0_5 = arith.constant 0 : index
    %c0_6 = arith.constant 0 : index
    %4 = vector.load %arg3[%c0_5, %c0_6] : memref<32x4xf32, #tpu.memory_space<vmem>>, vector<32x4xf32>
    %cst_7 = arith.constant dense<0.000000e+00> : vector<16x4xf32>
    %5 = tpu.matmul %0, %4, %cst_7 {dimension_numbers = #tpu.dot_dimension_numbers<[1], [0], [0], [1], [0, 0, 1, 1], [], []>} : vector<16x32xf32>, vector<32x4xf32>, vector<16x4xf32> -> vector<16x4xf32>
    %c0_8 = arith.constant 0 : index
    %c0_9 = arith.constant 0 : index
    %6 = vector.load %arg4[%c0_8, %c0_9] : memref<4x32xf32, #tpu.memory_space<vmem>>, vector<4x32xf32>
    %cst_10 = arith.constant dense<0.000000e+00> : vector<16x32xf32>
    %7 = tpu.matmul %5, %6, %cst_10 {dimension_numbers = #tpu.dot_dimension_numbers<[1], [0], [0], [1], [0, 0, 1, 1], [], []>} : vector<16x4xf32>, vector<4x32xf32>, vector<16x32xf32> -> vector<16x32xf32>
    %cst_11 = arith.constant 2.500000e-01 : f32
    %8 = vector.broadcast %cst_11 : f32 to vector<16x32xf32>
    %9 = arith.mulf %8, %7 : vector<16x32xf32>
    %10 = arith.addf %2, %9 : vector<16x32xf32>
    %c0_12 = arith.constant 0 : index
    %c0_13 = arith.constant 0 : index
    %11 = vector.load %arg6[%c0_12, %c0_13] : memref<16x32xf32, #tpu.memory_space<vmem>>, vector<16x32xf32>
    tpu.vector_store %arg6[%c0_12, %c0_13], %10 {strides = array<i32>} : memref<16x32xf32, #tpu.memory_space<vmem>>, vector<16x32xf32>,
    return
  }
  func.func @transform_0(%arg0: i32) -> (i32, i32) {
    %c0_i32 = arith.constant 0 : i32
    %c0_i32_0 = arith.constant 0 : i32
    return %arg0, %c0_i32 : i32, i32
  }
  func.func @transform_1(%arg0: i32) -> (i32, i32) {
    %c0_i32 = arith.constant 0 : i32
    %c0_i32_0 = arith.constant 0 : i32
    %c0_i32_1 = arith.constant 0 : i32
    return %c0_i32, %c0_i32_0 : i32, i32
  }
  func.func @transform_2(%arg0: i32) -> (i32, i32) {
    %c0_i32 = arith.constant 0 : i32
    %c0_i32_0 = arith.constant 0 : i32
    %c0_i32_1 = arith.constant 0 : i32
    return %c0_i32, %c0_i32_0 : i32, i32
  }
  func.func @transform_3(%arg0: i32) -> (i32, i32) {
    %c0_i32 = arith.constant 0 : i32
    %c0_i32_0 = arith.constant 0 : i32
    %c0_i32_1 = arith.constant 0 : i32
    return %c0_i32, %c0_i32_0 : i32, i32
  }
  func.func @transform_4(%arg0: i32) -> (i32, i32) {
    %c0_i32 = arith.constant 0 : i32
    %c0_i32_0 = arith.constant 0 : i32
    return %arg0, %c0_i32 : i32, i32
  }
  func.func @transform_5(%arg0: i32) -> (i32, i32) {
    %c0_i32 = arith.constant 0 : i32
    %c0_i32_0 = arith.constant 0 : i32
    return %arg0, %c0_i32 : i32, i32
  }
}

</mosaic_0001>

<bundles_post_ra>
// kernel: tpu_custom_call.1
= control target key start
LH: loop header
LB: loop body
LE: loop exit
PB: predicated region body
PF: predicated region fallthrough
CT: control target
= control target key end

     0   :  { %11 = vsyncpa [#allocation3], 0  ;;  %s587_s0 = inlined_call_operand.hbm [shape: f32[16,32], index: 0, kind: input, shape index: {}]   ;;  %s588_s1 = inlined_call_operand.vmem [shape: f32[32,32], index: 1, kind: input, shape index: {}]   ;;  %s589_s2 = inlined_call_operand.vmem [shape: f32[32,4], index: 2, kind: input, shape index: {}]   ;;  %s590_s3 = inlined_call_operand.vmem [shape: f32[4,32], index: 3, kind: input, shape index: {}]   ;;  %s591_s4 = inlined_call_operand.hbm [shape: f32[16,32], index: 4, kind: output, shape index: {0}]   ;;  %s592_s5 = inlined_call_operand.hbm [shape: f32[16,32], index: 5, kind: output, shape index: {1}]  }
   0x1   :  { %12 = vsyncpa [#allocation4], 0 }
   0x2   :  { %13 = vsyncpa [#allocation7], 0  ;;  %s472_s18 = smov [#allocation2]   ;;  %s400_s22 = scalar_lea.hbm %s587_s0, 256 }
   0x3   :  { %s19_s19 = sshll.u32 %s472_s18, 4  ;;  %p401_p0 = scmp.ne.s32.totalorder %s587_s0, %s400_s22  ;;  %s20_s19 = int_to_ptr.vmem [resolvable:$true] %s19_s19 }
   0x4   :  { %p404_p1 = scmp.lt.u32.totalorder %s400_s22, %s587_s0 }
   0x6   :  { %p406_p2 = pnand %p404_p1, %p401_p0 }
   0x8   :  { %409 = shalt.err (!%p406_p2)
}
   0x9   :  { %s410_s27 = scalar_lea.vmem %s20_s19, 256  ;;  %p415_p4 = scmp.lt.s32.totalorder %s20_s19, %s20_s19 }
   0xa   :  { %p411_p3 = scmp.ne.s32.totalorder %s20_s19, %s410_s27  ;;  %p416_p5 = scmp.lt.s32.totalorder %s410_s27, %s410_s27 }
   0xc   :  { %p417_p6 = por %p416_p5, %p415_p4 }
   0xe   :  { %p418_p7 = pnand %p417_p6, %p411_p3 }
  0x10   :  { %421 = shalt.err (!%p418_p7)
}
  0x11   :  { %s473_s28 = smov 128   ;;  %s474_s29 = smov 8  }
  0x12   :  { %25 = dma.hbm_to_vmem [thread:$0]  %s587_s0, 256, %s20_s19, [#allocation3], %s473_s28, %s473_s28, %s474_s29  }
  0x13   :  { %466 = dma.done.wait [#allocation3], 256  }
  0x14   :  { %467 = vsyncadd [#allocation3], 4294967040  ;;  %vm41_vm0 = vcmask 261120   ;;  %v125_v0 = vld [vmem:[%s589_s2] sm:$0xff]  ;;  %v126_v1 = vld [vmem:[%s589_s2 + $0x8] sm:$0xff]  ;;  %vm212_vm1 = vcmask 1043456  }
  0x15   :  { %v127_v2 = vld [vmem:[%s589_s2 + $0x10] sm:$0xff]  ;;  %v387_v3 = vpack.c.bf16 %v126_v1, %v125_v0  ;;  %v128_v4 = vld [vmem:[%s589_s2 + $0x18] sm:$0xff]  ;;  %v35_v5 = vld [vmem:[#allocation2] sm:$0xff]  ;;  %vm205_vm2 = vcmask 31744  }
  0x16   :  { %v391_v6 = vpack.c.bf16 %v128_v4, %v127_v2  ;;  %371 = vmatprep.mubr.msk.f32.mxu1 %vm41_vm0, %v35_v5  ;;  %v37_v7 = vld [vmem:[%s588_s1] sm:$0xff]  ;;  %v38_v8 = vld [vmem:[%s588_s1 + $0x8] sm:$0xff]  ;;  %v39_v9 = vld [vmem:[%s588_s1 + $0x10] sm:$0xff]  ;;  %360 = vmatprep.mubr.msk.f32.mxu0 %vm41_vm0, %v35_v5 }
  0x17   :  { %388 = vmatprep.subr.bf16.mxu1 %v387_v3  ;;  %v379_v10 = vpack.c.bf16 %v38_v8, %v37_v7  ;;  %v40_v11 = vld [vmem:[%s588_s1 + $0x18] sm:$0xff]  ;;  %v36_v13 = vld [vmem:[#allocation2 + $0x8] sm:$0xff]  ;;  %v204_v14 = vld [vmem:[%s590_s3] sm:$0xf]  ;;  %s475_s1 = smov [#allocation5]  }
  0x18   :  { %390 = vmatpush3.bf16.msra.mxu1 %v387_v3  ;;  %v383_v12 = vpack.c.bf16 %v40_v11, %v39_v9  ;;  %s302_s3 = sshll.u32 %s475_s1, 4  ;;  %s303_s3 = int_to_ptr.vmem [resolvable:$true] %s302_s3 }
  0x19   :  { %392 = vmatprep.subr.bf16.mxu1 %v391_v6  ;;  %380 = vmatprep.subr.bf16.mxu0 %v379_v10  ;;  %s422_s23 = scalar_lea.vmem %s303_s3, 256  ;;  %p427_p9 = scmp.lt.s32.totalorder %s303_s3, %s303_s3 }
  0x1a   :  { %382 = vmatpush3.bf16.msra.mxu0 %v379_v10  ;;  %p423_p8 = scmp.ne.s32.totalorder %s303_s3, %s422_s23  ;;  %p428_p10 = scmp.lt.s32.totalorder %s422_s23, %s422_s23 }
  0x1b   :  { %384 = vmatprep.subr.bf16.mxu0 %v383_v12 }
  0x1c   :  { %394 = vmatpush3.bf16.msra.mxu1 %v391_v6  ;;  %p429_p11 = por %p428_p10, %p427_p9 }
  0x1e   :  { %386 = vmatpush3.bf16.msra.mxu0 %v383_v12  ;;  %p430_p12 = pnand %p429_p11, %p423_p8 }
  0x1f   :  { %372 = vmatmul.mubr.msk.f32.vlgmr.msra.gmra.mrb[0].mxu1 %vm41_vm0, %v36_v13  ;;  %374 = vmatprep.subr.msk.mxu0 %vm212_vm1, %v204_v14 }
  0x21   :  { %361 = vmatmul.mubr.msk.f32.vlgmr.msra.gmra.mrb[0].mxu0 %vm41_vm0, %v36_v13 }
  0x22   :  { %375 = vmatpush3.msk.msra.mxu0 %vm212_vm1, %v204_v14 }
  0xf2   :  { %v373_v15 = vpop.f32.mrb[0].mxu1 }
  0xf3   :  { %v195_v16 = vpop.f32.mrb[1].mxu1 }
  0xf4   :  { %376 = vmatprep.mubr.msk.f32.mxu0 %vm205_vm2, %v195_v16  ;;  %v362_v17 = vpop.f32.mrb[0].mxu0 }
  0xf5   :  { %377 = vmatmul.mubr.msk.f32.vlgmr.msra.gmra.mrb[2].mxu0 %vm205_vm2, %v373_v15  ;;  %124 = vst.msk [vmem:[#allocation5 + $0x8] sm:$0xff] %vm41_vm0, %v362_v17  ;;  %v114_v18 = vpop.f32.mrb[1].mxu0 }
  0xf6   :  { %123 = vst.msk [vmem:[#allocation5] sm:$0xff] %vm41_vm0, %v114_v18 }
  0xf7   :  { %433 = shalt.err (!%p430_p12)
}
  0xf8   :  { %s434_s26 = scalar_lea.hbm %s591_s4, 256 }
  0xf9   :  { %p435_p13 = scmp.ne.s32.totalorder %s591_s4, %s434_s26  ;;  %p438_p0 = scmp.lt.u32.totalorder %s434_s26, %s591_s4 }
  0xfb   :  { %p440_p1 = pnand %p438_p0, %p435_p13 }
  0xfd   :  { %443 = shalt.err (!%p440_p1)
}
  0xfe   :  { %308 = dma.vmem_to_hbm [thread:$0]  %s303_s3, 256, %s591_s4, [#allocation4], %s473_s28, %s473_s28, %s474_s29  }
  0xff   :  { %s476_s10 = smov [#allocation6]  }
 0x100   :  { %s314_s11 = sshll.u32 %s476_s10, 4  ;;  %s315_s11 = int_to_ptr.vmem [resolvable:$true] %s314_s11 }
 0x101   :  { %s444_s12 = scalar_lea.vmem %s315_s11, 256  ;;  %p449_p3 = scmp.lt.s32.totalorder %s315_s11, %s315_s11 }
 0x102   :  { %p445_p2 = scmp.ne.s32.totalorder %s315_s11, %s444_s12  ;;  %p450_p4 = scmp.lt.s32.totalorder %s444_s12, %s444_s12 }
 0x104   :  { %p451_p5 = por %p450_p4, %p449_p3 }
 0x106   :  { %p452_p6 = pnand %p451_p5, %p445_p2 }
 0x1c8   :  { %v378_v19 = vpop.f32.mrb[2].mxu0 }
 0x1c9   :  { %v292_v20 = vmul.f32 0.25, %v378_v19  ;;  %v282_v21 = vpop.f32.mrb[3].mxu0 }
 0x1ca   :  { %v291_v22 = vmul.f32 0.25, %v282_v21 }
 0x1cb   :  { %v294_v23 = vadd.f32 %v362_v17, %v292_v20 }
 0x1cc   :  { %v293_v24 = vadd.f32 %v291_v22, %v114_v18 }
 0x1cd   :  { %296 = vst.msk [vmem:[#allocation6 + $0x8] sm:$0xff] %vm41_vm0, %v294_v23 }
 0x1ce   :  { %295 = vst.msk [vmem:[#allocation6] sm:$0xff] %vm41_vm0, %v293_v24 }
 0x1cf   :  { %455 = shalt.err (!%p452_p6)
}
 0x1d0   :  { %s456_s14 = scalar_lea.hbm %s592_s5, 256 }
 0x1d1   :  { %p457_p7 = scmp.ne.s32.totalorder %s592_s5, %s456_s14  ;;  %p460_p8 = scmp.lt.u32.totalorder %s456_s14, %s592_s5 }
 0x1d3   :  { %p462_p9 = pnand %p460_p8, %p457_p7 }
 0x1d5   :  { %465 = shalt.err (!%p462_p9)
}
 0x1d6   :  { %320 = dma.vmem_to_hbm [thread:$0]  %s315_s11, 256, %s592_s5, [#allocation7], %s473_s28, %s473_s28, %s474_s29  }
 0x1d7   :  { %468 = dma.done.wait [#allocation4], 256  }
 0x1d8   :  { %469 = vsyncadd [#allocation4], 4294967040 }
 0x1d9   :  { %470 = dma.done.wait [#allocation7], 256  }
 0x1da   :  { %471 = vsyncadd [#allocation7], 4294967040 }
 0x1db   :  { %327 = vsyncpa [#allocation3], 1 }
 0x1dc   :  { %328 = vsyncpa [#allocation4], 1 }
 0x1dd   :  { %329 = vsyncpa [#allocation7], 1 }

</bundles_post_ra>
